<compile_context>
chip_gen: v7x
topology: tpu7x:2x2x1
jax: 0.10.0
libtpu: 0.0.40
codegen_flags: <defaults>
</compile_context>

<pallas_src>
import jax
import jax.numpy as jnp
from jax.experimental import pallas as pl
from jax.experimental.pallas import tpu as pltpu


def timesiren_kernel(x_ref, w1_ref, w2_ref, b2_ref, o_ref):
    x = x_ref[...]        # (tm, input_dim)
    w1 = w1_ref[...]      # (input_dim, emb_dim)  -- resident
    w2 = w2_ref[...]      # (emb_dim, emb_dim)    -- resident, already (in, out)
    b2 = b2_ref[...]      # (1, emb_dim)          -- resident

    if x.shape[1] == 1:
        # K=1 contraction == outer product: a single VPU broadcast multiply.
        # Keeps the MXU (and its fill/drain latency) off the critical path.
        h = jnp.sin(x * w1)                                   # (tm,1)*(1,emb)->(tm,emb)
    else:
        h = jnp.sin(jnp.dot(x, w1, preferred_element_type=jnp.float32))

    # Second linear on the MXU with f32 accumulation; bias via implicit broadcast.
    y = jnp.dot(h, w2, preferred_element_type=jnp.float32) + b2
    o_ref[...] = y.astype(o_ref.dtype)


def prepare_time_siren_params(w1, w2, b2):
    """One-time layout prep (call at parameter-init time, NOT per forward).

    w1: (emb_dim, input_dim) PyTorch layout -> (input_dim, emb_dim)
    w2: (emb_dim, emb_dim)   PyTorch layout -> (emb_dim, emb_dim) transposed
    b2: (emb_dim,)                          -> (1, emb_dim) broadcast row
    """
    emb_dim, input_dim = w1.shape
    if input_dim == 1:
        w1_t = w1.reshape(1, emb_dim)      # pure metadata reshape, no transpose
    else:
        w1_t = jnp.transpose(w1)
    w2_t = jnp.transpose(w2)
    b2_row = b2.reshape(1, emb_dim)
    return w1_t, w2_t, b2_row


def _pick_block_rows(n):
    # Largest power-of-two multiple of 8 (<=1024) that divides n; else whole extent.
    for tm in (1024, 512, 256, 128, 64, 32, 16, 8):
        if n % tm == 0:
            return tm
    return n


def time_siren_forward(x, w1_t, w2_t, b2_row):
    """x: (N, input_dim); params already prepared by prepare_time_siren_params."""
    n, input_dim = x.shape
    emb_dim = w2_t.shape[1]

    tm = _pick_block_rows(n)
    grid = (pl.cdiv(n, tm),)

    return pl.pallas_call(
        timesiren_kernel,
        out_shape=jax.ShapeDtypeStruct((n, emb_dim), x.dtype),
        grid=grid,
        in_specs=[
            pl.BlockSpec((tm, input_dim), lambda i: (i, 0)),       # x tile (pipelined)
            pl.BlockSpec((input_dim, emb_dim), lambda i: (0, 0)),  # w1 resident
            pl.BlockSpec((emb_dim, emb_dim), lambda i: (0, 0)),    # w2 resident
            pl.BlockSpec((1, emb_dim), lambda i: (0, 0)),          # b2 resident
        ],
        out_specs=pl.BlockSpec((tm, emb_dim), lambda i: (i, 0)),
        compiler_params=pltpu.CompilerParams(
            dimension_semantics=("parallel",),  # shard batch axis across TCs on v7x
        ),
    )(x, w1_t, w2_t, b2_row)


if __name__ == "__main__":
    # Canonical TimeSiren shapes (time embedding): batch=8, input_dim=1, emb_dim=32.
    batch, input_dim, emb_dim = 8, 1, 32

    key = jax.random.PRNGKey(0)
    kx, kw1, kw2, kb2, kx2 = jax.random.split(key, 5)

    x = jax.random.normal(kx, (batch, input_dim), dtype=jnp.float32)
    # PyTorch Linear weight layout: (out_features, in_features).
    w1 = jax.random.normal(kw1, (emb_dim, input_dim), dtype=jnp.float32) * 0.5
    w2 = jax.random.normal(kw2, (emb_dim, emb_dim), dtype=jnp.float32) * 0.1
    b2 = jax.random.normal(kb2, (emb_dim,), dtype=jnp.float32) * 0.01

    # One-time parameter layout prep (hoisted out of the forward path).
    w1_t, w2_t, b2_row = prepare_time_siren_params(w1, w2, b2)

    # Pure-JAX reference.
    def ref_fn(xx):
        return jnp.sin(xx @ w1.T) @ w2.T + b2

    # 1) Canonical small batch (single grid step).
    y = time_siren_forward(x, w1_t, w2_t, b2_row)
    jax.block_until_ready(y)
    assert y.shape == (batch, emb_dim)
    assert jnp.allclose(y, ref_fn(x), atol=1e-5, rtol=1e-5), "mismatch vs reference (N=8)"

    # 2) Slightly larger batch to exercise the multi-step tiled grid path.
    n2 = 80  # -> block_rows=16, grid=(5,)
    x2 = jax.random.normal(kx2, (n2, input_dim), dtype=jnp.float32)
    y2 = time_siren_forward(x2, w1_t, w2_t, b2_row)
    jax.block_until_ready(y2)
    assert y2.shape == (n2, emb_dim)
    assert jnp.allclose(y2, ref_fn(x2), atol=1e-5, rtol=1e-5), "mismatch vs reference (N=80)"

    print("KERNEL_OK")
</pallas_src>

<mosaic_0001>
module attributes {stable_mosaic.version = 11 : i64} {
  func.func @timesiren_kernel(%arg0: i32, %arg1: memref<8x1xf32, #tpu.memory_space<vmem>>, %arg2: memref<1x32xf32, #tpu.memory_space<vmem>>, %arg3: memref<32x32xf32, #tpu.memory_space<vmem>>, %arg4: memref<1x32xf32, #tpu.memory_space<vmem>>, %arg5: memref<8x32xf32, #tpu.memory_space<vmem>>) attributes {dimension_semantics = [#tpu.dimension_semantics<parallel>], iteration_bounds = array<i64: 1>, scalar_prefetch = 0 : i64, scratch_operands = 0 : i64, tpu.core_type = #tpu.core_type<tc>, window_params = [{transform_indices = @transform_0, window_bounds = array<i64: 8, 1>}, {pipeline_mode = #tpu.pipeline_mode<synchronous>, transform_indices = @transform_1, window_bounds = array<i64: 1, 32>}, {pipeline_mode = #tpu.pipeline_mode<synchronous>, transform_indices = @transform_2, window_bounds = array<i64: 32, 32>}, {pipeline_mode = #tpu.pipeline_mode<synchronous>, transform_indices = @transform_3, window_bounds = array<i64: 1, 32>}, {transform_indices = @transform_4, window_bounds = array<i64: 8, 32>}]} {
    %c0 = arith.constant 0 : index
    %c0_0 = arith.constant 0 : index
    %0 = vector.load %arg1[%c0, %c0_0] : memref<8x1xf32, #tpu.memory_space<vmem>>, vector<8x1xf32>
    %c0_1 = arith.constant 0 : index
    %c0_2 = arith.constant 0 : index
    %1 = vector.load %arg2[%c0_1, %c0_2] : memref<1x32xf32, #tpu.memory_space<vmem>>, vector<1x32xf32>
    %c0_3 = arith.constant 0 : index
    %c0_4 = arith.constant 0 : index
    %2 = vector.load %arg3[%c0_3, %c0_4] : memref<32x32xf32, #tpu.memory_space<vmem>>, vector<32x32xf32>
    %c0_5 = arith.constant 0 : index
    %c0_6 = arith.constant 0 : index
    %3 = vector.load %arg4[%c0_5, %c0_6] : memref<1x32xf32, #tpu.memory_space<vmem>>, vector<1x32xf32>
    %4 = vector.broadcast %0 : vector<8x1xf32> to vector<8x32xf32>
    %5 = vector.broadcast %1 : vector<1x32xf32> to vector<8x32xf32>
    %6 = arith.mulf %4, %5 : vector<8x32xf32>
    %7 = math.sin %6 : vector<8x32xf32>
    %cst = arith.constant dense<0.000000e+00> : vector<8x32xf32>
    %8 = tpu.matmul %7, %2, %cst {dimension_numbers = #tpu.dot_dimension_numbers<[1], [0], [0], [1], [0, 0, 1, 1], [], []>} : vector<8x32xf32>, vector<32x32xf32>, vector<8x32xf32> -> vector<8x32xf32>
    %9 = vector.broadcast %3 : vector<1x32xf32> to vector<8x32xf32>
    %10 = arith.addf %8, %9 : vector<8x32xf32>
    %c0_7 = arith.constant 0 : index
    %c0_8 = arith.constant 0 : index
    %11 = vector.load %arg5[%c0_7, %c0_8] : memref<8x32xf32, #tpu.memory_space<vmem>>, vector<8x32xf32>
    tpu.vector_store %arg5[%c0_7, %c0_8], %10 {strides = array<i32>} : memref<8x32xf32, #tpu.memory_space<vmem>>, vector<8x32xf32>,
    return
  }
  func.func @transform_0(%arg0: i32) -> (i32, i32) {
    %c0_i32 = arith.constant 0 : i32
    %c0_i32_0 = arith.constant 0 : i32
    return %arg0, %c0_i32 : i32, i32
  }
  func.func @transform_1(%arg0: i32) -> (i32, i32) {
    %c0_i32 = arith.constant 0 : i32
    %c0_i32_0 = arith.constant 0 : i32
    %c0_i32_1 = arith.constant 0 : i32
    return %c0_i32, %c0_i32_0 : i32, i32
  }
  func.func @transform_2(%arg0: i32) -> (i32, i32) {
    %c0_i32 = arith.constant 0 : i32
    %c0_i32_0 = arith.constant 0 : i32
    %c0_i32_1 = arith.constant 0 : i32
    return %c0_i32, %c0_i32_0 : i32, i32
  }
  func.func @transform_3(%arg0: i32) -> (i32, i32) {
    %c0_i32 = arith.constant 0 : i32
    %c0_i32_0 = arith.constant 0 : i32
    %c0_i32_1 = arith.constant 0 : i32
    return %c0_i32, %c0_i32_0 : i32, i32
  }
  func.func @transform_4(%arg0: i32) -> (i32, i32) {
    %c0_i32 = arith.constant 0 : i32
    %c0_i32_0 = arith.constant 0 : i32
    return %arg0, %c0_i32 : i32, i32
  }
}

</mosaic_0001>

<bundles_post_ra>
// kernel: tpu_custom_call.1
= control target key start
LH: loop header
LB: loop body
LE: loop exit
PB: predicated region body
PF: predicated region fallthrough
CT: control target
= control target key end

     0   :  { %9 = vsyncpa [#allocation3], 0  ;;  %s444_s0 = inlined_call_operand.vmem [shape: f32[8,1], index: 0, kind: input, shape index: {}]   ;;  %s445_s1 = inlined_call_operand.vmem [shape: f32[1,32], index: 1, kind: input, shape index: {}]   ;;  %s446_s2 = inlined_call_operand.hbm [shape: f32[32,32], index: 2, kind: input, shape index: {}]   ;;  %s447_s3 = inlined_call_operand.vmem [shape: f32[1,32], index: 3, kind: input, shape index: {}]   ;;  %s448_s4 = inlined_call_operand.hbm [shape: f32[8,32], index: 4, kind: output, shape index: {}]  }
   0x1   :  { %10 = vsyncpa [#allocation4], 0  ;;  %s351_s15 = smov [#allocation2]   ;;  %s303_s19 = scalar_lea.hbm %s446_s2, 512 }
   0x2   :  { %s20_s16 = sshll.u32 %s351_s15, 4  ;;  %p304_p0 = scmp.ne.s32.totalorder %s446_s2, %s303_s19  ;;  %s21_s16 = int_to_ptr.vmem [resolvable:$true] %s20_s16 }
   0x3   :  { %p307_p1 = scmp.lt.u32.totalorder %s303_s19, %s446_s2 }
   0x5   :  { %p309_p2 = pnand %p307_p1, %p304_p0 }
   0x7   :  { %312 = shalt.err (!%p309_p2)
}
   0x8   :  { %s313_s24 = scalar_lea.vmem %s21_s16, 512  ;;  %p318_p4 = scmp.lt.s32.totalorder %s21_s16, %s21_s16 }
   0x9   :  { %p314_p3 = scmp.ne.s32.totalorder %s21_s16, %s313_s24  ;;  %p319_p5 = scmp.lt.s32.totalorder %s313_s24, %s313_s24 }
   0xb   :  { %p320_p6 = por %p319_p5, %p318_p4 }
   0xd   :  { %p321_p7 = pnand %p320_p6, %p314_p3 }
   0xf   :  { %324 = shalt.err (!%p321_p7)
}
  0x10   :  { %s352_s25 = smov 128   ;;  %s353_s26 = smov 8  }
  0x11   :  { %26 = dma.hbm_to_vmem [thread:$0]  %s446_s2, 512, %s21_s16, [#allocation3], %s352_s25, %s352_s25, %s353_s26  }
  0x12   :  { %347 = dma.done.wait [#allocation3], 512  }
  0x13   :  { %348 = vsyncadd [#allocation3], 4294966784  ;;  %v354_v0 = vmov 0   ;;  %v32_v1 = vld [vmem:[%s444_s0] sm:$0xff]  ;;  %v34_v2 = vld [vmem:[#allocation2] sm:$0xff]  ;;  %v355_v5 = vmov 0.0|0.0  }
  0x14   :  { %298 = vset.pattern.permute.xlu0 %v354_v0  ;;  %v35_v3 = vld [vmem:[#allocation2 + $0x8] sm:$0xff]  ;;  %v36_v4 = vld [vmem:[#allocation2 + $0x10] sm:$0xff]  ;;  %274 = vmatprep.subr.bf16.mxu0 %v355_v5  ;;  %v37_v7 = vld [vmem:[#allocation2 + $0x18] sm:$0xff]  ;;  %vm356_vm0 = vmmov 0   ;;  %v357_v8 = vmov 0.0   ;;  %vm161_vm13 = vcmask 261120  }
  0x15   :  { %41 = vperm.xlu0 %298, %v32_v1   ;;  %v275_v6 = vpack.c.bf16 %v35_v3, %v34_v2  ;;  %271 = vmatprep.mubr.msk.f32.mxu0 %vm356_vm0, %v357_v8  ;;  %v278_v9 = vpack.c.bf16 %v37_v7, %v36_v4  ;;  %v251_v10 = vld [vmem:[%s445_s1] ss:$0 sm:$0xff]  ;;  %v358_v23 = vmov 683565275   ;;  %v359_v25 = vmov 2475754826  }
  0x16   :  { %v360_v28 = vmov 2131351028   ;;  %v361_v31 = vmov 2102212464   ;;  %v362_v34 = vmov 920167782  }
  0x17   :  { %276 = vmatpush3.bf16.msra.mxu0 %v275_v6  ;;  %v363_v37 = vmov 1326507024   ;;  %s364_s6 = smov [#allocation5]  }
  0x18   :  { %277 = vmatprep.subr.bf16.mxu0 %v355_v5  ;;  %s242_s7 = sshll.u32 %s364_s6, 4  ;;  %s243_s7 = int_to_ptr.vmem [resolvable:$true] %s242_s7 }
  0x19   :  { %s325_s8 = scalar_lea.vmem %s243_s7, 128  ;;  %p330_p9 = scmp.lt.s32.totalorder %s243_s7, %s243_s7 }
  0x1a   :  { %p326_p8 = scmp.ne.s32.totalorder %s243_s7, %s325_s8  ;;  %p331_p10 = scmp.lt.s32.totalorder %s325_s8, %s325_s8 }
  0x1b   :  { %279 = vmatpush3.bf16.msra.mxu0 %v278_v9 }
  0x1c   :  { %p332_p11 = por %p331_p10, %p330_p9 }
  0x1e   :  { %p333_p12 = pnand %p332_p11, %p326_p8 }
  0x94   :  { %v42_v11 = vpop.permute.xlu0 %41 }
  0x95   :  { %v408_v12 = vmul.f32 %v251_v10, %v42_v11 }
  0x97   :  { %v54_v13 = vand.u32 2139095040, %v408_v12  ;;  %v51_v17 = vand.u32 2147483647, %v408_v12  ;;  %vm53_vm8 = vcmp.lt.s32.totalorder %v408_v12, 0  ;;  %vm143_vm14 = vweird.f32 %v408_v12 }
  0x99   :  { %v55_v14 = vshrl.u32 %v54_v13, 23  ;;  %v58_v20 = vand.u32 8388607, %v51_v17  ;;  %vm52_vm9 = vcmp.le.f32.partialorder %v51_v17, 0.7853982 }
  0x9b   :  { %v252_v15 = vadd.s32 4294967169, %v55_v14  ;;  %v59_v39 = vor.u32 8388608, %v58_v20 }
  0x9d   :  { %v61_v16 = vadd.s32 1, %v252_v15  ;;  %v99_v53 = vshll.u32 %v59_v39, 8 }
  0x9f   :  { %vm62_vm1 = vcmp.gt.s32.totalorder %v61_v16, 0 }
  0xa0   :  { %v63_v18 = vsel %vm62_vm1, %v61_v16, 0 }
  0xa1   :  { %v65_v19 = vand.u32 31, %v63_v18  ;;  %v64_v22 = vshrl.u32 %v63_v18, 5 }
  0xa3   :  { %v66_v21 = vsub.s32 32, %v65_v19  ;;  %v68_v24 = vshll.u32 %v358_v23, %v65_v19  ;;  %v71_v26 = vshll.u32 %v359_v25, %v65_v19  ;;  %v74_v30 = vshll.u32 %v360_v28, %v65_v19 }
  0xa4   :  { %v77_v33 = vshll.u32 %v361_v31, %v65_v19  ;;  %v80_v36 = vshll.u32 %v362_v34, %v65_v19  ;;  %vm83_vm2 = vcmp.lt.s32.totalorder %v64_v22, 1  ;;  %vm86_vm3 = vcmp.lt.s32.totalorder %v64_v22, 4 }
  0xa5   :  { %v69_v27 = vshrl.u32 %v359_v25, %v66_v21  ;;  %v72_v29 = vshrl.u32 %v360_v28, %v66_v21  ;;  %v75_v32 = vshrl.u32 %v361_v31, %v66_v21  ;;  %v78_v35 = vshrl.u32 %v362_v34, %v66_v21 }
  0xa6   :  { %v81_v38 = vshrl.u32 %v363_v37, %v66_v21  ;;  %v67_v48 = vshrl.u32 %v358_v23, %v66_v21  ;;  %vm85_vm4 = vcmp.lt.s32.totalorder %v64_v22, 3  ;;  %vm84_vm5 = vcmp.lt.s32.totalorder %v64_v22, 2 }
  0xa7   :  { %v70_v40 = vor.u32 %v69_v27, %v68_v24  ;;  %v73_v41 = vor.u32 %v72_v29, %v71_v26  ;;  %v76_v42 = vor.u32 %v75_v32, %v74_v30  ;;  %v79_v43 = vor.u32 %v78_v35, %v77_v33 }
  0xa8   :  { %v82_v44 = vor.u32 %v81_v38, %v80_v36 }
  0xa9   :  { %v88_v45 = vsel %vm86_vm3, %v76_v42, 2102212464  ;;  %v91_v46 = vsel %vm83_vm2, %v70_v40, %v73_v41  ;;  %v95_v47 = vsel %vm83_vm2, %v73_v41, %v76_v42  ;;  %v92_v49 = vsel %vm86_vm3, %v79_v43, 920167782 }
  0xaa   :  { %v96_v50 = vsel %vm86_vm3, %v82_v44, 1326507024  ;;  %v93_v51 = vsel %vm85_vm4, %v76_v42, %v92_v49  ;;  %v87_v54 = vsel %vm83_vm2, %v67_v48, %v70_v40  ;;  %v89_v55 = vsel %vm85_vm4, %v73_v41, %v88_v45  ;;  %v256_v41 = vld [vmem:[%s447_s3] ss:$0 sm:$0xff] }
  0xab   :  { %v97_v52 = vsel %vm85_vm4, %v79_v43, %v96_v50  ;;  %v94_v56 = vsel %vm84_vm5, %v91_v46, %v93_v51  ;;  %v90_v62 = vsel %vm84_vm5, %v87_v54, %v89_v55 }
  0xac   :  { %v98_v57 = vsel %vm84_vm5, %v95_v47, %v97_v52  ;;  %v417_v60 = vmul.u32.u64.low %v99_v53, %v94_v56  ;;  %v418_v61 = vmul.u32.u64.high %v99_v53, %v94_v56, %v417_v60  ;;  %v106_v0 = vmul.u32 %v99_v53, %v90_v62 }
  0xad   :  { %v414_v58 = vmul.u32.u64.low %v99_v53, %v98_v57  ;;  %v415_v59 = vmul.u32.u64.high %v99_v53, %v98_v57, %v414_v58 }
  0xae   :  { %v109_v63 = vadd.s32 1, %v418_v61 }
  0xaf   :  { %vm108_vm6 = vc.u32 %v415_v59, %v417_v60  ;;  %v107_v13 = vadd.s32 %v417_v60, %v415_v59 }
  0xb0   :  { %v110_v1 = vsel %vm108_vm6, %v109_v63, %v418_v61 }
  0xb1   :  { %v111_v2 = vadd.s32 %v110_v1, %v106_v0 }
  0xb3   :  { %v112_v3 = vadd.s32 536870912, %v111_v2 }
  0xb5   :  { %v113_v4 = vshrl.u32 %v112_v3, 30 }
  0xb7   :  { %v114_v5 = vshll.u32 %v113_v4, 30  ;;  %v137_v26 = vsub.s32 4, %v113_v4 }
  0xb9   :  { %v115_v6 = vsub.s32 %v111_v2, %v114_v5  ;;  %v138_v29 = vsel %vm53_vm8, %v137_v26, %v113_v4 }
  0xba   :  { %v140_v31 = vsel %vm52_vm9, 0, %v138_v29 }
  0xbb   :  { %v117_v7 = vsub.s32 0, %v115_v6  ;;  %v144_v32 = vadd.s32 3, %v140_v31 }
  0xbd   :  { %v253_v8 = vmin.u32 %v117_v7, %v115_v6  ;;  %v145_v33 = vand.u32 3, %v144_v32 }
  0xbf   :  { %v119_v9 = vclz %v253_v8  ;;  %vm150_vm10 = vcmp.eq.s32.totalorder %v145_v33, 2  ;;  %vm147_vm11 = vcmp.eq.s32.totalorder %v145_v33, 0  ;;  %vm146_vm12 = vcmp.lt.s32.totalorder %v145_v33, 2 }
  0xc1   :  { %v254_v10 = vadd.s32 4294967294, %v119_v9 }
  0xc3   :  { %vm255_vm7 = vcmp.lt.s32.totalorder %v254_v10, 0 }
  0xc4   :  { %v122_v11 = vsel %vm255_vm7, 0, %v254_v10 }
  0xc5   :  { %v123_v14 = vsub.s32 32, %v122_v11  ;;  %v127_v15 = vsub.s32 4294967266, %v122_v11  ;;  %v124_v16 = vshll.u32 %v115_v6, %v122_v11 }
  0xc7   :  { %v125_v18 = vshrl.u32 %v107_v13, %v123_v14  ;;  %v128_v19 = vadd.s32 127, %v127_v15 }
  0xc9   :  { %v126_v20 = vor.u32 %v125_v18, %v124_v16  ;;  %v129_v21 = vshll.u32 %v128_v19, 23 }
  0xcb   :  { %v130_v22 = vor.u32 4788187, %v129_v21  ;;  %v133_v24 = vcvt.s32.f32 %v126_v20 }
  0xcd   :  { %v131_v23 = vand.u32 2147483647, %v130_v22 }
  0xcf   :  { %v134_v25 = vmul.f32 %v133_v24, %v131_v23 }
  0xd1   :  { %v135_v27 = vxor.u32 2147483648, %v134_v25 }
  0xd3   :  { %v136_v28 = vsel %vm53_vm8, %v135_v27, %v134_v25 }
  0xd4   :  { %v139_v30 = vsel %vm52_vm9, %v408_v12, %v136_v28 }
  0xd5   :  { %299 = vcosq.f32 %v139_v30 }
  0xd6   :  { %301 = vsinq.f32 %v139_v30 }
  0xdf   :  { %v300_v34 = vpop.eup %299 }
  0xe0   :  { %v302_v35 = vpop.eup %301  ;;  %v151_v36 = vxor.u32 2147483648, %v300_v34 }
  0xe1   :  { %v148_v37 = vxor.u32 2147483648, %v302_v35 }
  0xe2   :  { %v152_v38 = vsel %vm150_vm10, %v151_v36, %v302_v35 }
  0xe3   :  { %v149_v39 = vsel %vm147_vm11, %v300_v34, %v148_v37 }
  0xe4   :  { %v153_v17 = vsel %vm146_vm12, %v149_v39, %v152_v38 }
  0xe5   :  { %v154_v40 = vsel %vm143_vm14, nan, %v153_v17 }
  0xe6   :  { %272 = vmatmul.mubr.msk.f32.vlgmr.msra.gmra.mrb[0].mxu0 %vm161_vm13, %v154_v40 }
 0x1b9   :  { %v231_v42 = vpop.f32.mrb[0].mxu0 }
 0x1ba   :  { %v232_v43 = vadd.f32 %v256_v41, %v231_v42  ;;  %v273_v44 = vpop.f32.mrb[1].mxu0 }
 0x1bc   :  { %235 = vst.msk [vmem:[#allocation5] sm:$0xff] %vm161_vm13, %v232_v43 }
 0x1bd   :  { %336 = shalt.err (!%p333_p12)
}
 0x1be   :  { %s337_s11 = scalar_lea.hbm %s448_s4, 128 }
 0x1bf   :  { %p338_p13 = scmp.ne.s32.totalorder %s448_s4, %s337_s11  ;;  %p341_p0 = scmp.lt.u32.totalorder %s337_s11, %s448_s4 }
 0x1c1   :  { %p343_p1 = pnand %p341_p0, %p338_p13 }
 0x1c3   :  { %346 = shalt.err (!%p343_p1)
}
 0x1c4   :  { %245 = dma.vmem_to_hbm [thread:$0]  %s243_s7, 128, %s448_s4, [#allocation4]  }
 0x1c5   :  { %349 = dma.done.wait [#allocation4], 128  }
 0x1c6   :  { %350 = vsyncadd [#allocation4], 4294967168 }
 0x1c7   :  { %249 = vsyncpa [#allocation3], 1 }
 0x1c8   :  { %250 = vsyncpa [#allocation4], 1 }

</bundles_post_ra>
